<compile_context>
chip_gen: v7x
topology: tpu7x:2x2x1
jax: 0.10.0
libtpu: 0.0.40
codegen_flags: <defaults>
</compile_context>

<pallas_src>
import functools

import jax
import jax.numpy as jnp
from jax.experimental import pallas as pl
from jax.experimental.pallas import tpu as pltpu


LN_EPS = 1e-5


# ----------------------------------------------------------------------------- helpers
def _round_up(x, m):
    return (x + m - 1) // m * m


def _pad2d(a, rows, cols):
    pr, pc = rows - a.shape[0], cols - a.shape[1]
    if pr or pc:
        a = jnp.pad(a, ((0, pr), (0, pc)))
    return a


def _largest_chunk_units(total_units, max_units):
    """Largest divisor of total_units that is <= max_units (at least 1)."""
    best = 1
    for u in range(1, total_units + 1):
        if total_units % u == 0 and u <= max_units:
            best = u
    return best


_PIPELINE_MODE_OK = None


def _pipeline_mode_supported():
    """One-time probe: does this build accept pipeline_mode=pl.Buffered(1)?"""
    global _PIPELINE_MODE_OK
    if _PIPELINE_MODE_OK is not None:
        return _PIPELINE_MODE_OK
    try:
        def _probe_kernel(a_ref, c_ref, o_ref):
            o_ref[...] = a_ref[...] + c_ref[...]

        fn = pl.pallas_call(
            _probe_kernel,
            out_shape=jax.ShapeDtypeStruct((16, 128), jnp.float32),
            grid=(2,),
            in_specs=[
                pl.BlockSpec((8, 128), lambda i: (i, 0)),
                pl.BlockSpec((8, 128), lambda i: (0, 0), pipeline_mode=pl.Buffered(1)),
            ],
            out_specs=pl.BlockSpec((8, 128), lambda i: (i, 0)),
        )
        jax.jit(fn).lower(jnp.zeros((16, 128), jnp.float32),
                          jnp.zeros((8, 128), jnp.float32)).compile()
        _PIPELINE_MODE_OK = True
    except Exception:
        _PIPELINE_MODE_OK = False
    return _PIPELINE_MODE_OK


# ----------------------------------------------------------------------------- kernels
def _ln_store(y, g_ref, beta_ref, o_ref, d_in):
    """LayerNorm (over the real d_in columns) + affine, store to o_ref. y is f32."""
    d_in_pad = y.shape[-1]
    inv_d = jnp.float32(1.0 / d_in)
    # Padded columns of y are exactly 0 by construction -> no mask needed for the mean.
    mean = jnp.sum(y, axis=-1, keepdims=True) * inv_d
    centered = y - mean
    if d_in != d_in_pad:
        col = jax.lax.broadcasted_iota(jnp.int32, (1, d_in_pad), 1)
        cm = jnp.where(col < d_in, centered, 0.0)
    else:
        cm = centered
    var = jnp.sum(cm * cm, axis=-1, keepdims=True) * inv_d
    norm = centered * jax.lax.rsqrt(var + jnp.float32(LN_EPS))
    o_ref[...] = (norm * g_ref[...] + beta_ref[...]).astype(o_ref.dtype)


def _ffn_fused_kernel(x_ref, w1_ref, b1_ref, w2_ref, b2_ref, g_ref, beta_ref,
                      o_ref, *, d_in):
    """Weights fully VMEM-resident; one row tile per grid step, no accumulator."""
    x = x_ref[...]
    w_dt = w1_ref.dtype
    h = jnp.dot(x.astype(w_dt), w1_ref[...], preferred_element_type=jnp.float32)
    h = jnp.maximum(h + b1_ref[...], 0.0)                      # b1 is f32
    y = jnp.dot(h.astype(w_dt), w2_ref[...], preferred_element_type=jnp.float32)
    y = y + b2_ref[...] + x.astype(jnp.float32)                # residual in f32
    _ln_store(y, g_ref, beta_ref, o_ref, d_in)


def _ffn_streamed_kernel(x_ref, w1_ref, b1_ref, w2_ref, b2_ref, g_ref, beta_ref,
                         o_ref, acc_ref, *, d_in):
    """d_hid streamed along grid axis 1 into an f32 VMEM accumulator."""
    k = pl.program_id(1)
    x = x_ref[...]
    w_dt = w1_ref.dtype
    h = jnp.dot(x.astype(w_dt), w1_ref[...], preferred_element_type=jnp.float32)
    h = jnp.maximum(h + b1_ref[...], 0.0)                      # per-chunk ReLU is exact
    partial = jnp.dot(h.astype(w_dt), w2_ref[...], preferred_element_type=jnp.float32)

    @pl.when(k == 0)
    def _first():
        acc_ref[...] = partial                                  # no zero-init pass

    @pl.when(k > 0)
    def _rest():
        acc_ref[...] += partial

    @pl.when(k == pl.num_programs(1) - 1)
    def _finalize():
        y = acc_ref[...] + b2_ref[...] + x.astype(jnp.float32)
        _ln_store(y, g_ref, beta_ref, o_ref, d_in)


# ----------------------------------------------------------------------------- builder
@functools.lru_cache(maxsize=None)
def _make_ffn_fn(B, L, d_in, d_hid, x_dtype_name, w_dtype_name, mxu_dtype_name,
                 tile_rows_req, tile_hid_req):
    x_dtype = jnp.dtype(x_dtype_name)
    w_store_dtype = jnp.dtype(mxu_dtype_name) if mxu_dtype_name else jnp.dtype(w_dtype_name)

    d_in_pad = _round_up(d_in, 128)
    d_hid_pad = _round_up(d_hid, 128)          # multiple of 128 only (no tile_hid rounding)
    rows = B * L
    rows8 = _round_up(max(rows, 1), 8)

    x_isz = x_dtype.itemsize
    w_isz = w_store_dtype.itemsize
    o_isz = x_dtype.itemsize

    # Chip-aware VMEM budget (per TensorCore) and row-tile target.
    try:
        vmem_cap = pltpu.get_tpu_info().vmem_capacity_bytes
    except Exception:
        vmem_cap = 64 * 1024 * 1024
    vmem_limit = vmem_cap * 3 // 4
    budget = int(vmem_limit * 0.9)

    try:
        kind = jax.devices()[0].device_kind.lower()
    except Exception:
        kind = ""
    if tile_rows_req is not None:
        tm_stream_target = int(tile_rows_req)
    elif "v6" in kind:
        tm_stream_target = 1024   # ~680 flops/byte crossover: keep weight re-stream hidden
    elif "v5" in kind:
        tm_stream_target = 256    # v5e is compute-bound first
    else:
        tm_stream_target = 512    # v7x (and unknown): faster HBM, smaller VMEM
    tk_target = int(tile_hid_req) if tile_hid_req is not None else 1024

    buffered_ok = _pipeline_mode_supported()
    inv_buf = 1 if buffered_ok else 2          # buffers per grid-invariant operand

    small_consts = inv_buf * (d_hid_pad + 3 * d_in_pad) * 4    # b1, b2, gamma, beta (f32)

    def fused_bytes(tm):
        w = inv_buf * 2 * d_in_pad * d_hid_pad * w_isz
        xio = 2 * tm * d_in_pad * (x_isz + o_isz)
        h = tm * d_hid_pad * 4
        tmp = 3 * tm * d_in_pad * 4
        return w + small_consts + xio + h + tmp

    def streamed_bytes(tm, tk):
        wch = 2 * (2 * d_in_pad * tk * w_isz + tk * 4)          # double-buffered chunks
        xio = 2 * tm * d_in_pad * (x_isz + o_isz)
        acc = tm * d_in_pad * 4
        h = tm * tk * 4
        tmp = 3 * tm * d_in_pad * 4
        return wch + small_consts + xio + acc + h + tmp

    # --- Residency decision: keep full weights in VMEM whenever they fit. ---
    resident = False
    tile_rows = 8
    tm_res_target = int(tile_rows_req) if tile_rows_req is not None else 256
    for tm in (tm_res_target, 256, 128, 64, 32, 16, 8):
        tm = max(8, min(_round_up(tm, 8), rows8))
        if fused_bytes(tm) <= budget:
            resident = True
            tile_rows = tm
            break

    if resident:
        tile_hid = d_hid_pad
    else:
        units = d_hid_pad // 128
        tile_hid = 128 * _largest_chunk_units(units, max(1, tk_target // 128))
        tm = max(8, min(_round_up(tm_stream_target, 8), rows8))
        while streamed_bytes(tm, tile_hid) > budget:
            if tile_hid > 128:
                tile_hid = 128 * _largest_chunk_units(units, tile_hid // 128 - 1)
            elif tm > 8:
                tm = max(8, _round_up(tm // 2, 8))
            else:
                break
        tile_rows = tm

    # --- Guarantee >= 2 row tiles (v7x has 2 TCs sharded over the parallel axis). ---
    rows_pad = _round_up(rows8, tile_rows)
    if rows_pad // tile_rows < 2 and rows8 > 8:
        tile_rows = max(8, _round_up((rows8 + 1) // 2, 8))
        rows_pad = _round_up(rows8, tile_rows)
    n_row_tiles = rows_pad // tile_rows
    n_hid = d_hid_pad // tile_hid

    # --- Advisory cost estimate (reflects the residency decision). ---
    w_bytes = 2 * d_in_pad * d_hid_pad * w_isz + (d_hid_pad + 3 * d_in_pad) * 4
    io_bytes = rows_pad * d_in_pad * (x_isz + o_isz)
    weight_passes = 1 if resident else n_row_tiles
    cost = pl.CostEstimate(
        flops=int(4 * rows_pad * d_in_pad * d_hid_pad),
        transcendentals=int(rows_pad),
        bytes_accessed=int(io_bytes + w_bytes * weight_passes),
    )

    const_mode = pl.Buffered(1) if buffered_ok else None

    def _spec(shape, imap, mode=None):
        if mode is None:
            return pl.BlockSpec(shape, imap)
        return pl.BlockSpec(shape, imap, pipeline_mode=mode)

    if resident:
        kern = functools.partial(_ffn_fused_kernel, d_in=d_in)
        call = pl.pallas_call(
            kern,
            out_shape=jax.ShapeDtypeStruct((rows_pad, d_in_pad), x_dtype),
            grid_spec=pltpu.PrefetchScalarGridSpec(
                num_scalar_prefetch=0,
                grid=(n_row_tiles,),
                in_specs=[
                    pl.BlockSpec((tile_rows, d_in_pad), lambda i: (i, 0)),       # x rows
                    _spec((d_in_pad, d_hid_pad), lambda i: (0, 0), const_mode),  # W1 (resident)
                    _spec((1, d_hid_pad), lambda i: (0, 0), const_mode),         # b1
                    _spec((d_hid_pad, d_in_pad), lambda i: (0, 0), const_mode),  # W2 (resident)
                    _spec((1, d_in_pad), lambda i: (0, 0), const_mode),          # b2
                    _spec((1, d_in_pad), lambda i: (0, 0), const_mode),          # gamma
                    _spec((1, d_in_pad), lambda i: (0, 0), const_mode),          # beta
                ],
                out_specs=pl.BlockSpec((tile_rows, d_in_pad), lambda i: (i, 0)),
            ),
            compiler_params=pltpu.CompilerParams(
                dimension_semantics=("parallel",),
                vmem_limit_bytes=int(vmem_limit),
            ),
            cost_estimate=cost,
        )
    else:
        kern = functools.partial(_ffn_streamed_kernel, d_in=d_in)
        call = pl.pallas_call(
            kern,
            out_shape=jax.ShapeDtypeStruct((rows_pad, d_in_pad), x_dtype),
            grid_spec=pltpu.PrefetchScalarGridSpec(
                num_scalar_prefetch=0,
                grid=(n_row_tiles, n_hid),
                in_specs=[
                    pl.BlockSpec((tile_rows, d_in_pad), lambda i, k: (i, 0)),    # x rows
                    pl.BlockSpec((d_in_pad, tile_hid), lambda i, k: (0, k)),     # W1 chunk
                    pl.BlockSpec((1, tile_hid), lambda i, k: (0, k)),            # b1 chunk
                    pl.BlockSpec((tile_hid, d_in_pad), lambda i, k: (k, 0)),     # W2 chunk
                    _spec((1, d_in_pad), lambda i, k: (0, 0), const_mode),       # b2
                    _spec((1, d_in_pad), lambda i, k: (0, 0), const_mode),       # gamma
                    _spec((1, d_in_pad), lambda i, k: (0, 0), const_mode),       # beta
                ],
                out_specs=pl.BlockSpec((tile_rows, d_in_pad), lambda i, k: (i, 0)),
                scratch_shapes=[pltpu.VMEM((tile_rows, d_in_pad), jnp.float32)],
            ),
            compiler_params=pltpu.CompilerParams(
                dimension_semantics=("parallel", "arbitrary"),
                vmem_limit_bytes=int(vmem_limit),
            ),
            cost_estimate=cost,
        )

    f32 = jnp.float32

    def run(x, w1, b1, w2, b2, gamma, beta):
        # Padding / dtype prep fused into the same jit as the kernel call.
        x2d = _pad2d(x.reshape(rows, d_in), rows_pad, d_in_pad)
        w1p = _pad2d(w1.astype(w_store_dtype), d_in_pad, d_hid_pad)
        w2p = _pad2d(w2.astype(w_store_dtype), d_hid_pad, d_in_pad)
        b1p = _pad2d(b1.astype(f32).reshape(1, d_hid), 1, d_hid_pad)
        b2p = _pad2d(b2.astype(f32).reshape(1, d_in), 1, d_in_pad)
        gp = _pad2d(gamma.astype(f32).reshape(1, d_in), 1, d_in_pad)
        bp = _pad2d(beta.astype(f32).reshape(1, d_in), 1, d_in_pad)
        out2d = call(x2d, w1p, b1p, w2p, b2p, gp, bp)
        return out2d[:rows, :d_in].reshape(B, L, d_in)

    return jax.jit(run)


def ffn_pallas(x, w1, b1, w2, b2, gamma, beta, *, mxu_dtype="auto",
               tile_rows=None, tile_hid=None):
    """x: (B, L, d_in) -> (B, L, d_in). W1: (d_in, d_hid), W2: (d_hid, d_in).

    mxu_dtype: "auto" (bf16 MXU operands when x is f32, f32 accumulation),
               None (exact: matmuls in the model dtype), or an explicit dtype.
    """
    B, L, d_in = x.shape
    d_hid = w1.shape[1]
    if isinstance(mxu_dtype, str) and mxu_dtype == "auto":
        mxu_name = "bfloat16" if x.dtype == jnp.float32 else None
    elif mxu_dtype is None:
        mxu_name = None
    else:
        mxu_name = jnp.dtype(mxu_dtype).name
    fn = _make_ffn_fn(
        int(B), int(L), int(d_in), int(d_hid),
        jnp.dtype(x.dtype).name, jnp.dtype(w1.dtype).name, mxu_name,
        None if tile_rows is None else int(tile_rows),
        None if tile_hid is None else int(tile_hid),
    )
    return fn(x, w1, b1, w2, b2, gamma, beta)


def reference_ffn(x, w1, b1, w2, b2, gamma, beta):
    """Plain-JAX reference matching the PyTorch forward (eval mode)."""
    h = jnp.maximum(jnp.einsum("bld,dh->blh", x, w1) + b1, 0.0)
    y = jnp.einsum("blh,hd->bld", h, w2) + b2
    y = y + x
    mean = jnp.mean(y, axis=-1, keepdims=True)
    var = jnp.mean((y - mean) ** 2, axis=-1, keepdims=True)
    return (y - mean) * jax.lax.rsqrt(var + LN_EPS) * gamma + beta


if __name__ == "__main__":
    # Small shapes consistent with FFN(d_in, d_hid) applied to (B, L, d_in).
    B, L, d_in, d_hid = 2, 8, 32, 64

    key = jax.random.PRNGKey(0)
    kx, k1, kb1, k2, kb2 = jax.random.split(key, 5)

    x = jax.random.normal(kx, (B, L, d_in), dtype=jnp.float32)

    # Conv1d 1x1 weights folded to matmul form:
    # torch weight (d_hid, d_in, 1) -> W1 = weight[:, :, 0].T of shape (d_in, d_hid).
    w1 = jax.random.normal(k1, (d_in, d_hid), dtype=jnp.float32) * (1.0 / jnp.sqrt(d_in))
    b1 = jax.random.normal(kb1, (d_hid,), dtype=jnp.float32) * 0.01
    w2 = jax.random.normal(k2, (d_hid, d_in), dtype=jnp.float32) * (1.0 / jnp.sqrt(d_hid))
    b2 = jax.random.normal(kb2, (d_in,), dtype=jnp.float32) * 0.01
    gamma = jnp.ones((d_in,), dtype=jnp.float32)   # nn.LayerNorm default weight
    beta = jnp.zeros((d_in,), dtype=jnp.float32)   # nn.LayerNorm default bias

    ref = reference_ffn(x, w1, b1, w2, b2, gamma, beta)

    # Exact path (f32 MXU operands): tight match vs the f32 reference.
    out_exact = jax.block_until_ready(
        ffn_pallas(x, w1, b1, w2, b2, gamma, beta, mxu_dtype=None))
    assert out_exact.shape == (B, L, d_in)
    assert jnp.allclose(out_exact, ref, atol=1e-4, rtol=1e-4), "exact path mismatch"

    # Default fast path (bf16 MXU operands, f32 accumulation + f32 LN epilogue).
    out_fast = jax.block_until_ready(ffn_pallas(x, w1, b1, w2, b2, gamma, beta))
    assert out_fast.shape == (B, L, d_in)
    assert jnp.allclose(out_fast, ref, atol=5e-2, rtol=5e-2), "bf16 path mismatch"

    print("KERNEL_OK")
</pallas_src>

<mosaic_0001>
module attributes {stable_mosaic.version = 11 : i64} {
  func.func @_ffn_fused_kernel(%arg0: i32, %arg1: memref<8x128xf32, #tpu.memory_space<vmem>>, %arg2: memref<128x128xf32, #tpu.memory_space<vmem>>, %arg3: memref<1x128xf32, #tpu.memory_space<vmem>>, %arg4: memref<128x128xf32, #tpu.memory_space<vmem>>, %arg5: memref<1x128xf32, #tpu.memory_space<vmem>>, %arg6: memref<1x128xf32, #tpu.memory_space<vmem>>, %arg7: memref<1x128xf32, #tpu.memory_space<vmem>>, %arg8: memref<8x128xf32, #tpu.memory_space<vmem>>) attributes {dimension_semantics = [#tpu.dimension_semantics<parallel>], iteration_bounds = array<i64: 2>, scalar_prefetch = 0 : i64, scratch_operands = 0 : i64, tpu.core_type = #tpu.core_type<tc>, window_params = [{transform_indices = @transform_0, window_bounds = array<i64: 8, 128>}, {pipeline_mode = #tpu.pipeline_mode<synchronous>, transform_indices = @transform_1, window_bounds = array<i64: 128, 128>}, {pipeline_mode = #tpu.pipeline_mode<synchronous>, transform_indices = @transform_2, window_bounds = array<i64: 1, 128>}, {pipeline_mode = #tpu.pipeline_mode<synchronous>, transform_indices = @transform_3, window_bounds = array<i64: 128, 128>}, {pipeline_mode = #tpu.pipeline_mode<synchronous>, transform_indices = @transform_4, window_bounds = array<i64: 1, 128>}, {pipeline_mode = #tpu.pipeline_mode<synchronous>, transform_indices = @transform_5, window_bounds = array<i64: 1, 128>}, {pipeline_mode = #tpu.pipeline_mode<synchronous>, transform_indices = @transform_6, window_bounds = array<i64: 1, 128>}, {transform_indices = @transform_7, window_bounds = array<i64: 8, 128>}]} {
    %c0 = arith.constant 0 : index
    %c0_0 = arith.constant 0 : index
    %0 = vector.load %arg1[%c0, %c0_0] : memref<8x128xf32, #tpu.memory_space<vmem>>, vector<8x128xf32>
    %c0_1 = arith.constant 0 : index
    %c0_2 = arith.constant 0 : index
    %1 = vector.load %arg2[%c0_1, %c0_2] : memref<128x128xf32, #tpu.memory_space<vmem>>, vector<128x128xf32>
    %cst = arith.constant dense<0.000000e+00> : vector<8x128xf32>
    %2 = tpu.matmul %0, %1, %cst {dimension_numbers = #tpu.dot_dimension_numbers<[1], [0], [0], [1], [0, 0, 1, 1], [], []>} : vector<8x128xf32>, vector<128x128xf32>, vector<8x128xf32> -> vector<8x128xf32>
    %c0_3 = arith.constant 0 : index
    %c0_4 = arith.constant 0 : index
    %3 = vector.load %arg3[%c0_3, %c0_4] : memref<1x128xf32, #tpu.memory_space<vmem>>, vector<1x128xf32>
    %4 = vector.broadcast %3 : vector<1x128xf32> to vector<8x128xf32>
    %5 = arith.addf %2, %4 : vector<8x128xf32>
    %cst_5 = arith.constant 0.000000e+00 : f32
    %6 = vector.broadcast %cst_5 : f32 to vector<8x128xf32>
    %7 = arith.maximumf %5, %6 : vector<8x128xf32>
    %c0_6 = arith.constant 0 : index
    %c0_7 = arith.constant 0 : index
    %8 = vector.load %arg4[%c0_6, %c0_7] : memref<128x128xf32, #tpu.memory_space<vmem>>, vector<128x128xf32>
    %cst_8 = arith.constant dense<0.000000e+00> : vector<8x128xf32>
    %9 = tpu.matmul %7, %8, %cst_8 {dimension_numbers = #tpu.dot_dimension_numbers<[1], [0], [0], [1], [0, 0, 1, 1], [], []>} : vector<8x128xf32>, vector<128x128xf32>, vector<8x128xf32> -> vector<8x128xf32>
    %c0_9 = arith.constant 0 : index
    %c0_10 = arith.constant 0 : index
    %10 = vector.load %arg5[%c0_9, %c0_10] : memref<1x128xf32, #tpu.memory_space<vmem>>, vector<1x128xf32>
    %11 = vector.broadcast %10 : vector<1x128xf32> to vector<8x128xf32>
    %12 = arith.addf %9, %11 : vector<8x128xf32>
    %13 = arith.addf %12, %0 : vector<8x128xf32>
    %cst_11 = arith.constant dense<0.000000e+00> : vector<8xf32>
    %14 = vector.multi_reduction <add>, %13, %cst_11 [1] : vector<8x128xf32> to vector<8xf32>
    %15 = vector.shape_cast %14 : vector<8xf32> to vector<8x1xf32>
    %cst_12 = arith.constant 3.125000e-02 : f32
    %16 = vector.broadcast %cst_12 : f32 to vector<8x1xf32>
    %17 = arith.mulf %15, %16 : vector<8x1xf32>
    %18 = vector.broadcast %17 : vector<8x1xf32> to vector<8x128xf32>
    %19 = arith.subf %13, %18 : vector<8x128xf32>
    %20 = tpu.iota {dimensions = array<i32: 1>} : vector<1x128xi32>
    %c32_i32 = arith.constant 32 : i32
    %21 = vector.broadcast %c32_i32 : i32 to vector<1x128xi32>
    %22 = arith.cmpi slt, %20, %21 : vector<1x128xi32>
    %cst_13 = arith.constant 0.000000e+00 : f32
    %23 = vector.shape_cast %22 : vector<1x128xi1> to vector<1x128xi1>
    %24 = vector.broadcast %23 : vector<1x128xi1> to vector<8x128xi1>
    %25 = vector.broadcast %cst_13 : f32 to vector<8x128xf32>
    %26 = arith.select %24, %19, %25 : vector<8x128xi1>, vector<8x128xf32>
    %27 = arith.mulf %26, %26 : vector<8x128xf32>
    %cst_14 = arith.constant dense<0.000000e+00> : vector<8xf32>
    %28 = vector.multi_reduction <add>, %27, %cst_14 [1] : vector<8x128xf32> to vector<8xf32>
    %29 = vector.shape_cast %28 : vector<8xf32> to vector<8x1xf32>
    %cst_15 = arith.constant 3.125000e-02 : f32
    %30 = vector.broadcast %cst_15 : f32 to vector<8x1xf32>
    %31 = arith.mulf %29, %30 : vector<8x1xf32>
    %cst_16 = arith.constant 9.99999974E-6 : f32
    %32 = vector.broadcast %cst_16 : f32 to vector<8x1xf32>
    %33 = arith.addf %31, %32 : vector<8x1xf32>
    %34 = math.rsqrt %33 : vector<8x1xf32>
    %35 = vector.broadcast %34 : vector<8x1xf32> to vector<8x128xf32>
    %36 = arith.mulf %19, %35 : vector<8x128xf32>
    %c0_17 = arith.constant 0 : index
    %c0_18 = arith.constant 0 : index
    %37 = vector.load %arg6[%c0_17, %c0_18] : memref<1x128xf32, #tpu.memory_space<vmem>>, vector<1x128xf32>
    %38 = vector.broadcast %37 : vector<1x128xf32> to vector<8x128xf32>
    %39 = arith.mulf %36, %38 : vector<8x128xf32>
    %c0_19 = arith.constant 0 : index
    %c0_20 = arith.constant 0 : index
    %40 = vector.load %arg7[%c0_19, %c0_20] : memref<1x128xf32, #tpu.memory_space<vmem>>, vector<1x128xf32>
    %41 = vector.broadcast %40 : vector<1x128xf32> to vector<8x128xf32>
    %42 = arith.addf %39, %41 : vector<8x128xf32>
    %c0_21 = arith.constant 0 : index
    %c0_22 = arith.constant 0 : index
    %43 = vector.load %arg8[%c0_21, %c0_22] : memref<8x128xf32, #tpu.memory_space<vmem>>, vector<8x128xf32>
    tpu.vector_store %arg8[%c0_21, %c0_22], %42 {strides = array<i32>} : memref<8x128xf32, #tpu.memory_space<vmem>>, vector<8x128xf32>,
    return
  }
  func.func @transform_0(%arg0: i32) -> (i32, i32) {
    %c0_i32 = arith.constant 0 : i32
    %c0_i32_0 = arith.constant 0 : i32
    return %arg0, %c0_i32 : i32, i32
  }
  func.func @transform_1(%arg0: i32) -> (i32, i32) {
    %c0_i32 = arith.constant 0 : i32
    %c0_i32_0 = arith.constant 0 : i32
    %c0_i32_1 = arith.constant 0 : i32
    return %c0_i32, %c0_i32_0 : i32, i32
  }
  func.func @transform_2(%arg0: i32) -> (i32, i32) {
    %c0_i32 = arith.constant 0 : i32
    %c0_i32_0 = arith.constant 0 : i32
    %c0_i32_1 = arith.constant 0 : i32
    return %c0_i32, %c0_i32_0 : i32, i32
  }
  func.func @transform_3(%arg0: i32) -> (i32, i32) {
    %c0_i32 = arith.constant 0 : i32
    %c0_i32_0 = arith.constant 0 : i32
    %c0_i32_1 = arith.constant 0 : i32
    return %c0_i32, %c0_i32_0 : i32, i32
  }
  func.func @transform_4(%arg0: i32) -> (i32, i32) {
    %c0_i32 = arith.constant 0 : i32
    %c0_i32_0 = arith.constant 0 : i32
    %c0_i32_1 = arith.constant 0 : i32
    return %c0_i32, %c0_i32_0 : i32, i32
  }
  func.func @transform_5(%arg0: i32) -> (i32, i32) {
    %c0_i32 = arith.constant 0 : i32
    %c0_i32_0 = arith.constant 0 : i32
    %c0_i32_1 = arith.constant 0 : i32
    return %c0_i32, %c0_i32_0 : i32, i32
  }
  func.func @transform_6(%arg0: i32) -> (i32, i32) {
    %c0_i32 = arith.constant 0 : i32
    %c0_i32_0 = arith.constant 0 : i32
    %c0_i32_1 = arith.constant 0 : i32
    return %c0_i32, %c0_i32_0 : i32, i32
  }
  func.func @transform_7(%arg0: i32) -> (i32, i32) {
    %c0_i32 = arith.constant 0 : i32
    %c0_i32_0 = arith.constant 0 : i32
    return %arg0, %c0_i32 : i32, i32
  }
}

</mosaic_0001>

<bundles_post_ra>
// kernel: run.1
= control target key start
LH: loop header
LB: loop body
LE: loop exit
PB: predicated region body
PF: predicated region fallthrough
CT: control target
= control target key end

     0   :  { %s779_s24 = smov 0   ;;  %s931_s0 = inlined_call_operand.vmem [shape: f32[16,128], index: 0, kind: input, shape index: {}]   ;;  %s932_s1 = inlined_call_operand.vmem [shape: f32[128,128], index: 1, kind: input, shape index: {}]   ;;  %s933_s2 = inlined_call_operand.vmem [shape: f32[1,128], index: 2, kind: input, shape index: {}]   ;;  %s934_s3 = inlined_call_operand.vmem [shape: f32[128,128], index: 3, kind: input, shape index: {}]   ;;  %s935_s4 = inlined_call_operand.vmem [shape: f32[1,128], index: 4, kind: input, shape index: {}]   ;;  %s936_s5 = inlined_call_operand.vmem [shape: f32[1,128], index: 5, kind: input, shape index: {}]   ;;  %s937_s6 = inlined_call_operand.vmem [shape: f32[1,128], index: 6, kind: input, shape index: {}]   ;;  %s938_s7 = inlined_call_operand.vmem [shape: f32[16,128], index: 7, kind: output, shape index: {}]  }
   0x1 LB: > { %s550_s25 = sadd.s32 4294967295, %s734_s24   ;;  %p554_p0 = scmp.ge.s32.totalorder %s734_s24, 1  ;;  %s734_s24 = sphi %s779_s24, %s17_s24  }
   0x2   : > { %p236_p1 = scmp.lt.s32.totalorder %s734_s24, 3 }
   0x4   : > { %p237_p2 = pnand %p554_p0, %p236_p1 }
   0x5   : > { %v275_v0 = vld [vmem:[%s932_s1] sm:$0xff] (!%p237_p2)  ;;  %v276_v1 = vld [vmem:[%s932_s1 + $0x8] sm:$0xff] (!%p237_p2)  ;;  %v277_v2 = vld [vmem:[%s932_s1 + $0x10] sm:$0xff] (!%p237_p2)  ;;  %v736_v3 = vmov (!%p237_p2), 0.0|0.0   ;;  %vm737_vm0 = vmmov (!%p237_p2), 0   ;;  %v738_v6 = vmov (!%p237_p2), 0.0   ;;  %v467_v61 = vlaneseq (!%p237_p2) }
   0x6   : > { %240 = sbr.rel (%p237_p2) target bundleno = 784 (0x310), region = 48  ;;  %667 = vmatprep.subr.bf16.mxu0 (!%p237_p2), %v736_v3  ;;  %v668_v4 = vpack.c.bf16 (!%p237_p2), %v276_v1, %v275_v0  ;;  %v278_v5 = vld [vmem:[%s932_s1 + $0x18] sm:$0xff] (!%p237_p2)  ;;  %629 = vmatprep.mubr.msk.f32.mxu0 (!%p237_p2), %vm737_vm0, %v738_v6  ;;  %v279_v8 = vld [vmem:[%s932_s1 + $0x20] sm:$0xff] (!%p237_p2)  ;;  %v280_v9 = vld [vmem:[%s932_s1 + $0x28] sm:$0xff] (!%p237_p2)  ;;  %p266_p3 = scmp.lt.s32.totalorder (!%p237_p2), %s550_s25, 1 }
   0x7   : > { %691 = vmatprep.subr.bf16.mxu1 (!%p237_p2), %v736_v3  ;;  %664 = vmatprep.mubr.msk.f32.mxu1 (!%p237_p2), %vm737_vm0, %v738_v6  ;;  %v671_v7 = vpack.c.bf16 (!%p237_p2), %v278_v5, %v277_v2  ;;  %v369_v10 = vld [vmem:[%s934_s3] sm:$0xff] (!%p237_p2)  ;;  %v370_v11 = vld [vmem:[%s934_s3 + $0x8] sm:$0xff] (!%p237_p2)  ;;  %v371_v13 = vld [vmem:[%s934_s3 + $0x10] sm:$0xff] (!%p237_p2)  ;;  %v674_v15 = vpack.c.bf16 (!%p237_p2), %v280_v9, %v279_v8  ;;  %v468_v62 = vand.u32 (!%p237_p2), 127, %v467_v61 }
   0x8   : > { %669 = vmatpush3.bf16.msra.mxu0 (!%p237_p2), %v668_v4  ;;  %v692_v12 = vpack.c.bf16 (!%p237_p2), %v370_v11, %v369_v10  ;;  %v372_v14 = vld [vmem:[%s934_s3 + $0x18] sm:$0xff] (!%p237_p2)  ;;  %v281_v16 = vld [vmem:[%s932_s1 + $0x30] sm:$0xff] (!%p237_p2)  ;;  %v373_v19 = vld [vmem:[%s934_s3 + $0x20] sm:$0xff] (!%p237_p2) }
   0x9   : > { %670 = vmatprep.subr.bf16.mxu0 (!%p237_p2), %v736_v3  ;;  %v282_v17 = vld [vmem:[%s932_s1 + $0x38] sm:$0xff] (!%p237_p2)  ;;  %v695_v18 = vpack.c.bf16 (!%p237_p2), %v372_v14, %v371_v13  ;;  %v374_v20 = vld [vmem:[%s934_s3 + $0x28] sm:$0xff] (!%p237_p2)  ;;  %v283_v22 = vld [vmem:[%s932_s1 + $0x40] sm:$0xff] (!%p237_p2)  ;;  %vm469_vm1 = vcmp.lt.s32.totalorder (!%p237_p2), %v468_v62, 32 }
   0xa   : > { %693 = vmatpush3.bf16.msra.mxu1 (!%p237_p2), %v692_v12  ;;  %v677_v21 = vpack.c.bf16 (!%p237_p2), %v282_v17, %v281_v16  ;;  %v284_v23 = vld [vmem:[%s932_s1 + $0x48] sm:$0xff] (!%p237_p2)  ;;  %v698_v24 = vpack.c.bf16 (!%p237_p2), %v374_v20, %v373_v19  ;;  %v375_v25 = vld [vmem:[%s934_s3 + $0x30] sm:$0xff] (!%p237_p2)  ;;  %v376_v26 = vld [vmem:[%s934_s3 + $0x38] sm:$0xff] (!%p237_p2) }
   0xb   : > { %694 = vmatprep.subr.bf16.mxu1 (!%p237_p2), %v736_v3  ;;  %v680_v27 = vpack.c.bf16 (!%p237_p2), %v284_v23, %v283_v22  ;;  %v285_v28 = vld [vmem:[%s932_s1 + $0x50] sm:$0xff] (!%p237_p2)  ;;  %v286_v29 = vld [vmem:[%s932_s1 + $0x58] sm:$0xff] (!%p237_p2)  ;;  %v701_v30 = vpack.c.bf16 (!%p237_p2), %v376_v26, %v375_v25  ;;  %v377_v31 = vld [vmem:[%s934_s3 + $0x40] sm:$0xff] (!%p237_p2) }
   0xc   : > { %672 = vmatpush3.bf16.msra.mxu0 (!%p237_p2), %v671_v7  ;;  %v378_v32 = vld [vmem:[%s934_s3 + $0x48] sm:$0xff] (!%p237_p2)  ;;  %v683_v33 = vpack.c.bf16 (!%p237_p2), %v286_v29, %v285_v28  ;;  %v287_v34 = vld [vmem:[%s932_s1 + $0x60] sm:$0xff] (!%p237_p2)  ;;  %v379_v37 = vld [vmem:[%s934_s3 + $0x50] sm:$0xff] (!%p237_p2) }
   0xd   : > { %673 = vmatprep.subr.bf16.mxu0 %v736_v3  ;;  %v288_v35 = vld [vmem:[%s932_s1 + $0x68] sm:$0xff]  ;;  %v704_v36 = vpack.c.bf16 %v378_v32, %v377_v31  ;;  %s940_s25 = smov (!%p266_p3, %s550_s25), 1  ;;  %v380_v38 = vld [vmem:[%s934_s3 + $0x58] sm:$0xff]  ;;  %v289_v40 = vld [vmem:[%s932_s1 + $0x70] sm:$0xff] }
   0xe   : > { %696 = vmatpush3.bf16.msra.mxu1 %v695_v18  ;;  %v686_v39 = vpack.c.bf16 %v288_v35, %v287_v34  ;;  %v290_v41 = vld [vmem:[%s932_s1 + $0x78] sm:$0xff]  ;;  %v707_v42 = vpack.c.bf16 %v380_v38, %v379_v37  ;;  %s555_s17 = sshll.u32 %s940_s25, 3  ;;  %v381_v43 = vld [vmem:[%s934_s3 + $0x60] sm:$0xff]  ;;  %v382_v44 = vld [vmem:[%s934_s3 + $0x68] sm:$0xff] }
   0xf   : > { %697 = vmatprep.subr.bf16.mxu1 %v736_v3  ;;  %v689_v45 = vpack.c.bf16 %v290_v41, %v289_v40  ;;  %s269_s26 = scalar_lea.vmem %s931_s0, %s555_s17  ;;  %v710_v46 = vpack.c.bf16 %v382_v44, %v381_v43  ;;  %v383_v48 = vld [vmem:[%s934_s3 + $0x70] sm:$0xff]  ;;  %v384_v49 = vld [vmem:[%s934_s3 + $0x78] sm:$0xff]  ;;  %v557_v51 = vld [vmem:[%s933_s2] ss:$0 sm:$0xff]  ;;  %s273_s19 = scalar_lea.vmem %s938_s7, %s555_s17 }
  0x10   : > { %675 = vmatpush3.bf16.msra.mxu0 %v674_v15  ;;  %v274_v47 = vld [vmem:[%s269_s26] sm:$0xff]  ;;  %v713_v50 = vpack.c.bf16 %v384_v49, %v383_v48 }
  0x11   : > { %676 = vmatprep.subr.bf16.mxu0 %v736_v3  ;;  %v558_v56 = vld [vmem:[%s935_s4] ss:$0 sm:$0xff] }
  0x12   : > { %699 = vmatpush3.bf16.msra.mxu1 %v698_v24  ;;  %v559_v8 = vld [vmem:[%s936_s5] ss:$0 sm:$0xff] }
  0x13   : > { %700 = vmatprep.subr.bf16.mxu1 %v736_v3  ;;  %v560_v10 = vld [vmem:[%s937_s6] ss:$0 sm:$0xff] }
  0x14   : > { %678 = vmatpush3.bf16.msra.mxu0 %v677_v21 }
  0x15   : > { %679 = vmatprep.subr.bf16.mxu0 %v736_v3 }
  0x16   : > { %702 = vmatpush3.bf16.msra.mxu1 %v701_v30 }
  0x17   : > { %703 = vmatprep.subr.bf16.mxu1 %v736_v3 }
  0x18   : > { %681 = vmatpush3.bf16.msra.mxu0 %v680_v27 }
  0x19   : > { %682 = vmatprep.subr.bf16.mxu0 %v736_v3 }
  0x1a   : > { %705 = vmatpush3.bf16.msra.mxu1 %v704_v36 }
  0x1b   : > { %706 = vmatprep.subr.bf16.mxu1 %v736_v3 }
  0x1c   : > { %684 = vmatpush3.bf16.msra.mxu0 %v683_v33 }
  0x1d   : > { %685 = vmatprep.subr.bf16.mxu0 %v736_v3 }
  0x1e   : > { %708 = vmatpush3.bf16.msra.mxu1 %v707_v42 }
  0x1f   : > { %709 = vmatprep.subr.bf16.mxu1 %v736_v3 }
  0x20   : > { %687 = vmatpush3.bf16.msra.mxu0 %v686_v39 }
  0x21   : > { %688 = vmatprep.subr.bf16.mxu0 %v736_v3 }
  0x22   : > { %711 = vmatpush3.bf16.msra.mxu1 %v710_v46 }
  0x23   : > { %712 = vmatprep.subr.bf16.mxu1 %v736_v3 }
  0x24   : > { %690 = vmatpush3.bf16.msra.mxu0 %v689_v45 }
  0x26   : > { %714 = vmatpush3.bf16.msra.mxu1 %v713_v50 }
  0x27   : > { %630 = vmatmul.mubr.f32.vlgmr.msra.gmra.mrb[0].mxu0 %v274_v47 }
  0xfa   : > { %v364_v52 = vpop.f32.mrb[0].mxu0 }
  0xfb   : > { %v365_v53 = vadd.f32 %v557_v51, %v364_v52  ;;  %v631_v54 = vpop.f32.mrb[1].mxu0 }
  0xfd   : > { %v368_v55 = vmax.f32 %v365_v53, 0.0 }
  0xff   : > { %665 = vmatmul.mubr.f32.vlgmr.msra.gmra.mrb[0].mxu1 %v368_v55 }
 0x1d2   : > { %v458_v57 = vpop.f32.mrb[0].mxu1 }
 0x1d3   : > { %v459_v58 = vadd.f32 %v558_v56, %v458_v57  ;;  %v666_v59 = vpop.f32.mrb[1].mxu1 }
 0x1d5   : > { %v462_v60 = vadd.f32 %v459_v58, %v274_v47 }
 0x1d7   : > { %463 = vadd.xlane.f32.xlu0 %v462_v60 }
 0x264   : > { %v464_v63 = vpop.xlane.xlu0 %463 }
 0x265   : > { %v465_v0 = vmul.f32 0.03125, %v464_v63 }
 0x267   : > { %v466_v1 = vsub.f32 %v462_v60, %v465_v0 }
 0x269   : > { %v472_v2 = vsel %vm469_vm1, %v466_v1, 0.0 }
 0x26a   : > { %v473_v3 = vmul.f32 %v472_v2, %v472_v2 }
 0x26c   : > { %474 = vadd.xlane.f32.xlu0 %v473_v3 }
 0x2f9   : > { %v475_v4 = vpop.xlane.xlu0 %474 }
 0x2fa   : > { %v476_v5 = vmul.f32 0.03125, %v475_v4 }
 0x2fc   : > { %v477_v6 = vadd.f32 1e-05, %v476_v5 }
 0x2fe   : > { %726 = vrsqrt.f32 %v477_v6 }
 0x308   : > { %v727_v7 = vpop.eup %726 }
 0x309   : > { %v479_v9 = vmul.f32 %v727_v7, %v466_v1 }
 0x30b   : > { %v487_v11 = vmul.f32 %v559_v8, %v479_v9 }
 0x30d   : > { %v495_v12 = vadd.f32 %v560_v10, %v487_v11 }
 0x30f   : > { %496 = vst [vmem:[%s273_s19] sm:$0xff] %v495_v12 }
 0x310 PF: > { %s17_s24 = sadd.s32 1, %s734_s24  }
 0x311   : > { %p14_p4 = scmp.ge.s32.totalorder %s17_s24, 4  }
 0x313   :  { %16 = sbr.rel (!%p14_p4) target bundleno = 1 (0x1), region = 78 }

</bundles_post_ra>
